<compile_context>
chip_gen: v7x
topology: tpu7x:2x2x1
jax: 0.10.0
libtpu: 0.0.40
codegen_flags: <defaults>
</compile_context>

<pallas_src>
import functools

import jax
import jax.numpy as jnp
from jax import lax
from jax.experimental import pallas as pl
from jax.experimental.pallas import tpu as pltpu


def bilstm_kernel(xf_ref, xb_ref,                   # (tc*bsz, D) bf16: chunk c / chunk nc-1-c
                  wih_f_ref, bias_f_ref,            # (D, 4H) bf16, (1, 4H) f32
                  wih_b_ref, bias_b_ref,            # (D, 4H) bf16, (1, 4H) f32
                  whh_f_ref, whh_b_ref,             # (H, 4H) bf16 each
                  w1_ref, b1_ref,                   # (2H, H1) bf16, (1, H1) f32
                  w2_ref, b2_ref,                   # (H1, O) bf16, (1, O) f32
                  out_ref,                          # (bsz, O) f32
                  hf_ref, hb_ref, cf_ref, cb_ref,   # (bsz, H) f32 state (persist across chunks)
                  af_ref, ab_ref,                   # (bsz, H) f32 mean-pool accumulators
                  gxf_ref, gxb_ref,                 # (tc*bsz, 4H) f32 per-chunk input projection
                  *, tc, bsz, hidden, inv_t, unroll):
    H = hidden
    c_idx = pl.program_id(1)                        # time-chunk axis (innermost, "arbitrary")

    @pl.when(c_idx == 0)
    def _init():
        for r in (hf_ref, hb_ref, cf_ref, cb_ref, af_ref, ab_ref):
            r[...] = jnp.zeros_like(r)

    # ---- hoisted input projection: ONE (tc*bsz, D) x (D, 4H) matmul per
    # direction per chunk, biases (b_ih + b_hh) folded in.  Two contiguous,
    # full-ref (lane-dense, unmasked) stores.
    gxf_ref[...] = (jnp.dot(xf_ref[...], wih_f_ref[...],
                            preferred_element_type=jnp.float32) + bias_f_ref[...])
    gxb_ref[...] = (jnp.dot(xb_ref[...], wih_b_ref[...],
                            preferred_element_type=jnp.float32) + bias_b_ref[...])

    whh_f = whh_f_ref[...]                          # resident across the recurrence
    whh_b = whh_b_ref[...]
    cd = whh_f.dtype

    def _sigmoid(x):
        # one EUP tanh + VPU fma instead of exp + divide on the serial path
        return 0.5 * jnp.tanh(0.5 * x) + 0.5

    def _cell(gates, c):                            # gates: (bsz, 4H) f32, PyTorch [i, f, g, o]
        i_g = _sigmoid(gates[:, 0 * H:1 * H])
        f_g = _sigmoid(gates[:, 1 * H:2 * H])
        g_g = jnp.tanh(gates[:, 2 * H:3 * H])
        o_g = _sigmoid(gates[:, 3 * H:4 * H])
        c_new = f_g * c + i_g * g_g
        h_new = o_g * jnp.tanh(c_new)
        return h_new, c_new

    def step(s, carry):
        hf, hb, cf, cb, af, ab = carry              # each (bsz, H) f32
        row_f = pl.multiple_of(s * bsz, bsz)
        row_b = pl.multiple_of((tc - 1 - s) * bsz, bsz)   # bwd dir walks its chunk in reverse time
        gx_f = gxf_ref[pl.ds(row_f, bsz), :]
        gx_b = gxb_ref[pl.ds(row_b, bsz), :]
        # Two per-direction hidden matmuls; they pipeline back-to-back on the
        # MXU and carry no zero-padded MACs (vs. block-diag fused whh).
        gates_f = jnp.dot(hf.astype(cd), whh_f, preferred_element_type=jnp.float32) + gx_f
        gates_b = jnp.dot(hb.astype(cd), whh_b, preferred_element_type=jnp.float32) + gx_b
        hf2, cf2 = _cell(gates_f, cf)
        hb2, cb2 = _cell(gates_b, cb)
        return hf2, hb2, cf2, cb2, af + hf2, ab + hb2     # mean pool == sum / T

    carry0 = (hf_ref[...], hb_ref[...], cf_ref[...], cb_ref[...],
              af_ref[...], ab_ref[...])
    hf1, hb1, cf1, cb1, af1, ab1 = lax.fori_loop(0, tc, step, carry0, unroll=unroll)
    hf_ref[...] = hf1
    hb_ref[...] = hb1
    cf_ref[...] = cf1
    cb_ref[...] = cb1
    af_ref[...] = af1
    ab_ref[...] = ab1

    # NOTE: out_ref is only written on the last chunk of each batch block; the
    # (b, 0) out_spec means Pallas writes the block back to HBM exactly after
    # that iteration, so this is the only write that must happen.
    @pl.when(c_idx == pl.num_programs(1) - 1)
    def _finalize():
        w1 = w1_ref[...]                            # (2H, H1): rows [fwd | bwd]
        pf = (af1 * inv_t).astype(w1.dtype)         # mean over time, fwd half
        pb = (ab1 * inv_t).astype(w1.dtype)         # mean over time, bwd half
        hid = (jnp.dot(pf, w1[:H, :], preferred_element_type=jnp.float32)
               + jnp.dot(pb, w1[H:, :], preferred_element_type=jnp.float32)
               + b1_ref[...])
        hid = jnp.maximum(hid, 0.0)
        # TODO(synk): Dropout is eval-mode identity here.
        out_ref[...] = (jnp.dot(hid.astype(w2_ref.dtype), w2_ref[...],
                                preferred_element_type=jnp.float32) + b2_ref[...])


def prepare_kernel_params(p, compute_dtype=jnp.bfloat16):
    """Cast PyTorch-layout (transposed) params to the kernel's compute dtypes."""
    return dict(
        wih_f=p["wih_f"].astype(compute_dtype), b_f=p["b_f"].astype(jnp.float32),
        wih_b=p["wih_b"].astype(compute_dtype), b_b=p["b_b"].astype(jnp.float32),
        whh_f=p["whh_f"].astype(compute_dtype), whh_b=p["whh_b"].astype(compute_dtype),
        w1=p["w1"].astype(compute_dtype), b1=p["b1"].astype(jnp.float32),
        w2=p["w2"].astype(compute_dtype), b2=p["b2"].astype(jnp.float32),
    )


def _full_spec(arr):
    n = arr.ndim
    return pl.BlockSpec(arr.shape, lambda b, c, n=n: (0,) * n)


def bilstm_forward(x, params, *, tc=8, batch_block=None, compute_dtype=jnp.bfloat16):
    """x: (B, T, D) float32 -> (B, O) float32.

    tc: time-chunk length (raise to 8-16 on v5e/v6e's 128 MiB VMEM; lower / use
    bf16 gx on v7x's 64 MiB).  batch_block: rows per batch grid block (lets
    v7x's two TensorCores split the batch); default = whole padded batch.
    """
    B, T, D = x.shape
    H = params["whh_f"].shape[0]
    H1 = params["w1"].shape[1]
    O = params["w2"].shape[1]

    # Pick a chunk size that divides T.  TODO(synk): ragged T needs padding +
    # masking of padded steps in the pooling accumulator (divide by real T).
    tc = max(1, min(tc, T))
    while T % tc:
        tc -= 1
    nc = T // tc

    # bf16 packs (16, 128) per vreg -> pad the batch to a multiple of 16.
    b_pad = max(16, -(-B // 16) * 16)
    bsz = b_pad if batch_block is None else max(16, -(-batch_block // 16) * 16)
    b_pad = -(-b_pad // bsz) * bsz
    n_bb = b_pad // bsz

    kp = prepare_kernel_params(params, compute_dtype)

    # Layout: (n_bb, T*bsz, D), time-major flattened slab per batch block.
    # No reversed copy of x is materialized: the backward direction consumes
    # the same array through a reversed chunk index_map.
    x_tbd = jnp.transpose(x, (1, 0, 2))                       # (T, B, D)
    if b_pad != B:
        x_tbd = jnp.pad(x_tbd, ((0, 0), (0, b_pad - B), (0, 0)))
    x_blk = (x_tbd.reshape(T, n_bb, bsz, D)
             .transpose(1, 0, 2, 3)
             .reshape(n_bb, T * bsz, D)
             .astype(compute_dtype))

    # Explicit VMEM budget: double-buffered x chunks (x2 directions), gx
    # scratch, state, weights, biases, output (+50% margin), capped at v7x's
    # 64 MiB physical VMEM.
    cd_bytes = jnp.dtype(compute_dtype).itemsize
    vmem_est = (
        2 * 2 * (tc * bsz * D) * cd_bytes             # fwd/bwd x chunks, double buffered
        + 2 * (tc * bsz * 4 * H) * 4                  # gx fwd/bwd scratch (f32)
        + 6 * bsz * H * 4                             # h/c/acc state
        + (2 * D * 4 * H + 2 * H * 4 * H + 2 * H * H1 + H1 * O) * cd_bytes
        + (2 * 4 * H + H1 + O) * 4                    # biases
        + 2 * bsz * O * 4                             # output block
    )
    vmem_limit = int(min(max(int(vmem_est * 1.5) + (4 << 20), 32 << 20), 64 << 20))

    kernel = functools.partial(bilstm_kernel, tc=tc, bsz=bsz, hidden=H,
                               inv_t=1.0 / T, unroll=1)

    out = pl.pallas_call(
        kernel,
        out_shape=jax.ShapeDtypeStruct((b_pad, O), jnp.float32),
        grid=(n_bb, nc),
        in_specs=[
            # forward-direction chunks: chunk c of batch block b
            pl.BlockSpec((None, tc * bsz, D), lambda b, c: (b, c, 0)),
            # backward-direction chunks: same HBM array, reversed chunk order
            pl.BlockSpec((None, tc * bsz, D), lambda b, c, nc=nc: (b, nc - 1 - c, 0)),
            _full_spec(kp["wih_f"]), _full_spec(kp["b_f"]),
            _full_spec(kp["wih_b"]), _full_spec(kp["b_b"]),
            _full_spec(kp["whh_f"]), _full_spec(kp["whh_b"]),
            _full_spec(kp["w1"]), _full_spec(kp["b1"]),
            _full_spec(kp["w2"]), _full_spec(kp["b2"]),
        ],
        out_specs=pl.BlockSpec((bsz, O), lambda b, c: (b, 0)),
        scratch_shapes=[
            pltpu.VMEM((bsz, H), jnp.float32),            # h fwd
            pltpu.VMEM((bsz, H), jnp.float32),            # h bwd
            pltpu.VMEM((bsz, H), jnp.float32),            # c fwd
            pltpu.VMEM((bsz, H), jnp.float32),            # c bwd
            pltpu.VMEM((bsz, H), jnp.float32),            # sum_t h fwd (mean pool)
            pltpu.VMEM((bsz, H), jnp.float32),            # sum_t h bwd
            pltpu.VMEM((tc * bsz, 4 * H), jnp.float32),   # gx fwd (per-chunk input proj)
            pltpu.VMEM((tc * bsz, 4 * H), jnp.float32),   # gx bwd
        ],
        compiler_params=pltpu.CompilerParams(
            dimension_semantics=("parallel", "arbitrary"),
            vmem_limit_bytes=vmem_limit),
    )(x_blk, x_blk,
      kp["wih_f"], kp["b_f"], kp["wih_b"], kp["b_b"],
      kp["whh_f"], kp["whh_b"], kp["w1"], kp["b1"], kp["w2"], kp["b2"])
    return out[:B]


def init_params(key, input_dim, output_dim, hidden_dim):
    """Deterministic synthetic parameters (shapes match nn.LSTM + classifier)."""
    H, D, O = hidden_dim, input_dim, output_dim
    ks = jax.random.split(key, 10)
    s = 0.1
    return {
        # per-direction: W_ih^T (D,4H), W_hh^T (H,4H), bias = b_ih + b_hh folded (1,4H)
        "wih_f": s * jax.random.normal(ks[0], (D, 4 * H), jnp.float32),
        "whh_f": s * jax.random.normal(ks[1], (H, 4 * H), jnp.float32),
        "b_f":   s * jax.random.normal(ks[2], (1, 4 * H), jnp.float32),
        "wih_b": s * jax.random.normal(ks[3], (D, 4 * H), jnp.float32),
        "whh_b": s * jax.random.normal(ks[4], (H, 4 * H), jnp.float32),
        "b_b":   s * jax.random.normal(ks[5], (1, 4 * H), jnp.float32),
        # classifier
        "w1": s * jax.random.normal(ks[6], (2 * H, H), jnp.float32),
        "b1": s * jax.random.normal(ks[7], (1, H), jnp.float32),
        "w2": s * jax.random.normal(ks[8], (H, O), jnp.float32),
        "b2": s * jax.random.normal(ks[9], (1, O), jnp.float32),
    }


def reference_forward(x, p, compute_dtype=jnp.bfloat16):
    """Pure-JAX reference mirroring PyTorch BiLSTM.forward (eval mode),
    with the same bf16-on-MXU / f32-accumulate casting as the kernel."""
    B, T, D = x.shape
    H = p["whh_f"].shape[0]

    def mdot(a, b):
        return jnp.dot(a.astype(compute_dtype), b.astype(compute_dtype),
                       preferred_element_type=jnp.float32)

    def run_dir(xs, wih, whh, b):
        def step(carry, xt):
            h, c = carry
            g = mdot(xt, wih) + mdot(h, whh) + b[0]
            i_g = jax.nn.sigmoid(g[:, :H])
            f_g = jax.nn.sigmoid(g[:, H:2 * H])
            g_g = jnp.tanh(g[:, 2 * H:3 * H])
            o_g = jax.nn.sigmoid(g[:, 3 * H:])
            c = f_g * c + i_g * g_g
            h = o_g * jnp.tanh(c)
            return (h, c), h
        init = (jnp.zeros((B, H), jnp.float32), jnp.zeros((B, H), jnp.float32))
        _, hs = lax.scan(step, init, xs)
        return hs  # (T, B, H)

    xs = jnp.transpose(x, (1, 0, 2))
    h_fwd = run_dir(xs, p["wih_f"], p["whh_f"], p["b_f"])
    h_bwd = run_dir(xs[::-1], p["wih_b"], p["whh_b"], p["b_b"])[::-1]
    lstm_out = jnp.concatenate([h_fwd, h_bwd], axis=-1)       # (T, B, 2H)
    pooled = jnp.mean(lstm_out, axis=0)                        # (B, 2H)
    hid = jnp.maximum(mdot(pooled, p["w1"]) + p["b1"][0], 0.0)
    return mdot(hid, p["w2"]) + p["b2"][0]


if __name__ == "__main__":
    B, T, D, H, O = 2, 8, 16, 32, 4
    key = jax.random.PRNGKey(0)
    kx, kp = jax.random.split(key)
    x = jax.random.normal(kx, (B, T, D), jnp.float32)
    params = init_params(kp, input_dim=D, output_dim=O, hidden_dim=H)

    out = jax.block_until_ready(bilstm_forward(x, params, tc=4))
    ref = jax.block_until_ready(reference_forward(x, params))

    assert out.shape == (B, O), out.shape
    assert jnp.allclose(out, ref, atol=2e-3, rtol=2e-3), (out, ref)
    print("KERNEL_OK")
</pallas_src>

<mosaic_0001>
module attributes {stable_mosaic.version = 11 : i64} {
  func.func @bilstm_kernel(%arg0: i32, %arg1: i32, %arg2: memref<1x64x16xbf16, #tpu.memory_space<vmem>>, %arg3: memref<1x64x16xbf16, #tpu.memory_space<vmem>>, %arg4: memref<16x128xbf16, #tpu.memory_space<vmem>>, %arg5: memref<1x128xf32, #tpu.memory_space<vmem>>, %arg6: memref<16x128xbf16, #tpu.memory_space<vmem>>, %arg7: memref<1x128xf32, #tpu.memory_space<vmem>>, %arg8: memref<32x128xbf16, #tpu.memory_space<vmem>>, %arg9: memref<32x128xbf16, #tpu.memory_space<vmem>>, %arg10: memref<64x32xbf16, #tpu.memory_space<vmem>>, %arg11: memref<1x32xf32, #tpu.memory_space<vmem>>, %arg12: memref<32x4xbf16, #tpu.memory_space<vmem>>, %arg13: memref<1x4xf32, #tpu.memory_space<vmem>>, %arg14: memref<16x4xf32, #tpu.memory_space<vmem>>, %arg15: memref<16x32xf32, #tpu.memory_space<vmem>>, %arg16: memref<16x32xf32, #tpu.memory_space<vmem>>, %arg17: memref<16x32xf32, #tpu.memory_space<vmem>>, %arg18: memref<16x32xf32, #tpu.memory_space<vmem>>, %arg19: memref<16x32xf32, #tpu.memory_space<vmem>>, %arg20: memref<16x32xf32, #tpu.memory_space<vmem>>, %arg21: memref<64x128xf32, #tpu.memory_space<vmem>>, %arg22: memref<64x128xf32, #tpu.memory_space<vmem>>) attributes {dimension_semantics = [#tpu.dimension_semantics<parallel>, #tpu.dimension_semantics<arbitrary>], iteration_bounds = array<i64: 1, 2>, scalar_prefetch = 0 : i64, scratch_operands = 8 : i64, tpu.core_type = #tpu.core_type<tc>, window_params = [{transform_indices = @transform_0, window_bounds = array<i64: 1, 64, 16>}, {transform_indices = @transform_1, window_bounds = array<i64: 1, 64, 16>}, {pipeline_mode = #tpu.pipeline_mode<synchronous>, transform_indices = @transform_2, window_bounds = array<i64: 16, 128>}, {pipeline_mode = #tpu.pipeline_mode<synchronous>, transform_indices = @transform_3, window_bounds = array<i64: 1, 128>}, {pipeline_mode = #tpu.pipeline_mode<synchronous>, transform_indices = @transform_4, window_bounds = array<i64: 16, 128>}, {pipeline_mode = #tpu.pipeline_mode<synchronous>, transform_indices = @transform_5, window_bounds = array<i64: 1, 128>}, {pipeline_mode = #tpu.pipeline_mode<synchronous>, transform_indices = @transform_6, window_bounds = array<i64: 32, 128>}, {pipeline_mode = #tpu.pipeline_mode<synchronous>, transform_indices = @transform_7, window_bounds = array<i64: 32, 128>}, {pipeline_mode = #tpu.pipeline_mode<synchronous>, transform_indices = @transform_8, window_bounds = array<i64: 64, 32>}, {pipeline_mode = #tpu.pipeline_mode<synchronous>, transform_indices = @transform_9, window_bounds = array<i64: 1, 32>}, {pipeline_mode = #tpu.pipeline_mode<synchronous>, transform_indices = @transform_10, window_bounds = array<i64: 32, 4>}, {pipeline_mode = #tpu.pipeline_mode<synchronous>, transform_indices = @transform_11, window_bounds = array<i64: 1, 4>}, {transform_indices = @transform_12, window_bounds = array<i64: 16, 4>}]} {
    %c0_i32 = arith.constant 0 : i32
    %0 = arith.cmpi eq, %arg1, %c0_i32 : i32
    %1 = arith.extui %0 : i1 to i32
    %c0_i32_0 = arith.constant 0 : i32
    %2 = arith.cmpi ne, %1, %c0_i32_0 : i32
    scf.if %2 {
      %cst_51 = arith.constant 0.000000e+00 : f32
      %38 = vector.broadcast %cst_51 : f32 to vector<16x32xf32>
      %c0_52 = arith.constant 0 : index
      %c0_53 = arith.constant 0 : index
      %39 = vector.load %arg15[%c0_52, %c0_53] : memref<16x32xf32, #tpu.memory_space<vmem>>, vector<16x32xf32>
      tpu.vector_store %arg15[%c0_52, %c0_53], %38 {strides = array<i32>} : memref<16x32xf32, #tpu.memory_space<vmem>>, vector<16x32xf32>,
      %cst_54 = arith.constant 0.000000e+00 : f32
      %40 = vector.broadcast %cst_54 : f32 to vector<16x32xf32>
      %c0_55 = arith.constant 0 : index
      %c0_56 = arith.constant 0 : index
      %41 = vector.load %arg16[%c0_55, %c0_56] : memref<16x32xf32, #tpu.memory_space<vmem>>, vector<16x32xf32>
      tpu.vector_store %arg16[%c0_55, %c0_56], %40 {strides = array<i32>} : memref<16x32xf32, #tpu.memory_space<vmem>>, vector<16x32xf32>,
      %cst_57 = arith.constant 0.000000e+00 : f32
      %42 = vector.broadcast %cst_57 : f32 to vector<16x32xf32>
      %c0_58 = arith.constant 0 : index
      %c0_59 = arith.constant 0 : index
      %43 = vector.load %arg17[%c0_58, %c0_59] : memref<16x32xf32, #tpu.memory_space<vmem>>, vector<16x32xf32>
      tpu.vector_store %arg17[%c0_58, %c0_59], %42 {strides = array<i32>} : memref<16x32xf32, #tpu.memory_space<vmem>>, vector<16x32xf32>,
      %cst_60 = arith.constant 0.000000e+00 : f32
      %44 = vector.broadcast %cst_60 : f32 to vector<16x32xf32>
      %c0_61 = arith.constant 0 : index
      %c0_62 = arith.constant 0 : index
      %45 = vector.load %arg18[%c0_61, %c0_62] : memref<16x32xf32, #tpu.memory_space<vmem>>, vector<16x32xf32>
      tpu.vector_store %arg18[%c0_61, %c0_62], %44 {strides = array<i32>} : memref<16x32xf32, #tpu.memory_space<vmem>>, vector<16x32xf32>,
      %cst_63 = arith.constant 0.000000e+00 : f32
      %46 = vector.broadcast %cst_63 : f32 to vector<16x32xf32>
      %c0_64 = arith.constant 0 : index
      %c0_65 = arith.constant 0 : index
      %47 = vector.load %arg19[%c0_64, %c0_65] : memref<16x32xf32, #tpu.memory_space<vmem>>, vector<16x32xf32>
      tpu.vector_store %arg19[%c0_64, %c0_65], %46 {strides = array<i32>} : memref<16x32xf32, #tpu.memory_space<vmem>>, vector<16x32xf32>,
      %cst_66 = arith.constant 0.000000e+00 : f32
      %48 = vector.broadcast %cst_66 : f32 to vector<16x32xf32>
      %c0_67 = arith.constant 0 : index
      %c0_68 = arith.constant 0 : index
      %49 = vector.load %arg20[%c0_67, %c0_68] : memref<16x32xf32, #tpu.memory_space<vmem>>, vector<16x32xf32>
      tpu.vector_store %arg20[%c0_67, %c0_68], %48 {strides = array<i32>} : memref<16x32xf32, #tpu.memory_space<vmem>>, vector<16x32xf32>,
    } else {
    }
    %c0 = arith.constant 0 : index
    %c0_1 = arith.constant 0 : index
    %c0_2 = arith.constant 0 : index
    %3 = vector.load %arg2[%c0, %c0_1, %c0_2] : memref<1x64x16xbf16, #tpu.memory_space<vmem>>, vector<1x64x16xbf16>
    %4 = vector.shape_cast %3 : vector<1x64x16xbf16> to vector<64x16xbf16>
    %c0_3 = arith.constant 0 : index
    %c0_4 = arith.constant 0 : index
    %5 = vector.load %arg4[%c0_3, %c0_4] : memref<16x128xbf16, #tpu.memory_space<vmem>>, vector<16x128xbf16>
    %cst = arith.constant dense<0.000000e+00> : vector<64x128xf32>
    %6 = tpu.matmul %4, %5, %cst {dimension_numbers = #tpu.dot_dimension_numbers<[1], [0], [0], [1], [0, 0, 1, 1], [], []>} : vector<64x16xbf16>, vector<16x128xbf16>, vector<64x128xf32> -> vector<64x128xf32>
    %c0_5 = arith.constant 0 : index
    %c0_6 = arith.constant 0 : index
    %7 = vector.load %arg5[%c0_5, %c0_6] : memref<1x128xf32, #tpu.memory_space<vmem>>, vector<1x128xf32>
    %8 = vector.broadcast %7 : vector<1x128xf32> to vector<64x128xf32>
    %9 = arith.addf %6, %8 : vector<64x128xf32>
    %c0_7 = arith.constant 0 : index
    %c0_8 = arith.constant 0 : index
    %10 = vector.load %arg21[%c0_7, %c0_8] : memref<64x128xf32, #tpu.memory_space<vmem>>, vector<64x128xf32>
    tpu.vector_store %arg21[%c0_7, %c0_8], %9 {strides = array<i32>} : memref<64x128xf32, #tpu.memory_space<vmem>>, vector<64x128xf32>,
    %c0_9 = arith.constant 0 : index
    %c0_10 = arith.constant 0 : index
    %c0_11 = arith.constant 0 : index
    %11 = vector.load %arg3[%c0_9, %c0_10, %c0_11] : memref<1x64x16xbf16, #tpu.memory_space<vmem>>, vector<1x64x16xbf16>
    %12 = vector.shape_cast %11 : vector<1x64x16xbf16> to vector<64x16xbf16>
    %c0_12 = arith.constant 0 : index
    %c0_13 = arith.constant 0 : index
    %13 = vector.load %arg6[%c0_12, %c0_13] : memref<16x128xbf16, #tpu.memory_space<vmem>>, vector<16x128xbf16>
    %cst_14 = arith.constant dense<0.000000e+00> : vector<64x128xf32>
    %14 = tpu.matmul %12, %13, %cst_14 {dimension_numbers = #tpu.dot_dimension_numbers<[1], [0], [0], [1], [0, 0, 1, 1], [], []>} : vector<64x16xbf16>, vector<16x128xbf16>, vector<64x128xf32> -> vector<64x128xf32>
    %c0_15 = arith.constant 0 : index
    %c0_16 = arith.constant 0 : index
    %15 = vector.load %arg7[%c0_15, %c0_16] : memref<1x128xf32, #tpu.memory_space<vmem>>, vector<1x128xf32>
    %16 = vector.broadcast %15 : vector<1x128xf32> to vector<64x128xf32>
    %17 = arith.addf %14, %16 : vector<64x128xf32>
    %c0_17 = arith.constant 0 : index
    %c0_18 = arith.constant 0 : index
    %18 = vector.load %arg22[%c0_17, %c0_18] : memref<64x128xf32, #tpu.memory_space<vmem>>, vector<64x128xf32>
    tpu.vector_store %arg22[%c0_17, %c0_18], %17 {strides = array<i32>} : memref<64x128xf32, #tpu.memory_space<vmem>>, vector<64x128xf32>,
    %c0_19 = arith.constant 0 : index
    %c0_20 = arith.constant 0 : index
    %19 = vector.load %arg8[%c0_19, %c0_20] : memref<32x128xbf16, #tpu.memory_space<vmem>>, vector<32x128xbf16>
    %c0_21 = arith.constant 0 : index
    %c0_22 = arith.constant 0 : index
    %20 = vector.load %arg9[%c0_21, %c0_22] : memref<32x128xbf16, #tpu.memory_space<vmem>>, vector<32x128xbf16>
    %c0_23 = arith.constant 0 : index
    %c0_24 = arith.constant 0 : index
    %21 = vector.load %arg15[%c0_23, %c0_24] : memref<16x32xf32, #tpu.memory_space<vmem>>, vector<16x32xf32>
    %c0_25 = arith.constant 0 : index
    %c0_26 = arith.constant 0 : index
    %22 = vector.load %arg16[%c0_25, %c0_26] : memref<16x32xf32, #tpu.memory_space<vmem>>, vector<16x32xf32>
    %c0_27 = arith.constant 0 : index
    %c0_28 = arith.constant 0 : index
    %23 = vector.load %arg17[%c0_27, %c0_28] : memref<16x32xf32, #tpu.memory_space<vmem>>, vector<16x32xf32>
    %c0_29 = arith.constant 0 : index
    %c0_30 = arith.constant 0 : index
    %24 = vector.load %arg18[%c0_29, %c0_30] : memref<16x32xf32, #tpu.memory_space<vmem>>, vector<16x32xf32>
    %c0_31 = arith.constant 0 : index
    %c0_32 = arith.constant 0 : index
    %25 = vector.load %arg19[%c0_31, %c0_32] : memref<16x32xf32, #tpu.memory_space<vmem>>, vector<16x32xf32>
    %c0_33 = arith.constant 0 : index
    %c0_34 = arith.constant 0 : index
    %26 = vector.load %arg20[%c0_33, %c0_34] : memref<16x32xf32, #tpu.memory_space<vmem>>, vector<16x32xf32>
    %c0_i32_35 = arith.constant 0 : i32
    %c4_i32 = arith.constant 4 : i32
    %27 = arith.addi %c0_i32_35, %c4_i32 : i32
    %c1_i32 = arith.constant 1 : i32
    %28:6 = scf.for %arg23 = %c0_i32_35 to %27 step %c1_i32 iter_args(%arg24 = %21, %arg25 = %22, %arg26 = %23, %arg27 = %24, %arg28 = %25, %arg29 = %26) -> (vector<16x32xf32>, vector<16x32xf32>, vector<16x32xf32>, vector<16x32xf32>, vector<16x32xf32>, vector<16x32xf32>)  : i32 {
      %c16_i32 = arith.constant 16 : i32
      %38 = arith.muli %arg23, %c16_i32 : i32
      %39 = tpu.assume_multiple %38, 16 : i32
      %c3_i32 = arith.constant 3 : i32
      %40 = arith.subi %c3_i32, %arg23 : i32
      %c16_i32_51 = arith.constant 16 : i32
      %41 = arith.muli %40, %c16_i32_51 : i32
      %42 = tpu.assume_multiple %41, 16 : i32
      %43 = arith.index_cast %39 : i32 to index
      %c0_52 = arith.constant 0 : index
      %44 = vector.load %arg21[%43, %c0_52] : memref<64x128xf32, #tpu.memory_space<vmem>>, vector<16x128xf32>
      %45 = arith.index_cast %42 : i32 to index
      %c0_53 = arith.constant 0 : index
      %46 = vector.load %arg22[%45, %c0_53] : memref<64x128xf32, #tpu.memory_space<vmem>>, vector<16x128xf32>
      %47 = arith.truncf %arg24 : vector<16x32xf32> to vector<16x32xbf16>
      %cst_54 = arith.constant dense<0.000000e+00> : vector<16x128xf32>
      %48 = tpu.matmul %47, %19, %cst_54 {dimension_numbers = #tpu.dot_dimension_numbers<[1], [0], [0], [1], [0, 0, 1, 1], [], []>} : vector<16x32xbf16>, vector<32x128xbf16>, vector<16x128xf32> -> vector<16x128xf32>
      %49 = arith.addf %48, %44 : vector<16x128xf32>
      %50 = arith.truncf %arg25 : vector<16x32xf32> to vector<16x32xbf16>
      %cst_55 = arith.constant dense<0.000000e+00> : vector<16x128xf32>
      %51 = tpu.matmul %50, %20, %cst_55 {dimension_numbers = #tpu.dot_dimension_numbers<[1], [0], [0], [1], [0, 0, 1, 1], [], []>} : vector<16x32xbf16>, vector<32x128xbf16>, vector<16x128xf32> -> vector<16x128xf32>
      %52 = arith.addf %51, %46 : vector<16x128xf32>
      %53 = vector.extract_strided_slice %49 {offsets = [0, 0], sizes = [16, 32], strides = [1, 1]} : vector<16x128xf32> to vector<16x32xf32>
      %cst_56 = arith.constant 5.000000e-01 : f32
      %54 = vector.broadcast %cst_56 : f32 to vector<16x32xf32>
      %55 = arith.mulf %54, %53 : vector<16x32xf32>
      %56 = math.tanh %55 : vector<16x32xf32>
      %cst_57 = arith.constant 5.000000e-01 : f32
      %57 = vector.broadcast %cst_57 : f32 to vector<16x32xf32>
      %58 = arith.mulf %57, %56 : vector<16x32xf32>
      %cst_58 = arith.constant 5.000000e-01 : f32
      %59 = vector.broadcast %cst_58 : f32 to vector<16x32xf32>
      %60 = arith.addf %58, %59 : vector<16x32xf32>
      %61 = vector.extract_strided_slice %49 {offsets = [0, 32], sizes = [16, 32], strides = [1, 1]} : vector<16x128xf32> to vector<16x32xf32>
      %cst_59 = arith.constant 5.000000e-01 : f32
      %62 = vector.broadcast %cst_59 : f32 to vector<16x32xf32>
      %63 = arith.mulf %62, %61 : vector<16x32xf32>
      %64 = math.tanh %63 : vector<16x32xf32>
      %cst_60 = arith.constant 5.000000e-01 : f32
      %65 = vector.broadcast %cst_60 : f32 to vector<16x32xf32>
      %66 = arith.mulf %65, %64 : vector<16x32xf32>
      %cst_61 = arith.constant 5.000000e-01 : f32
      %67 = vector.broadcast %cst_61 : f32 to vector<16x32xf32>
      %68 = arith.addf %66, %67 : vector<16x32xf32>
      %69 = vector.extract_strided_slice %49 {offsets = [0, 64], sizes = [16, 32], strides = [1, 1]} : vector<16x128xf32> to vector<16x32xf32>
      %70 = math.tanh %69 : vector<16x32xf32>
      %71 = vector.extract_strided_slice %49 {offsets = [0, 96], sizes = [16, 32], strides = [1, 1]} : vector<16x128xf32> to vector<16x32xf32>
      %cst_62 = arith.constant 5.000000e-01 : f32
      %72 = vector.broadcast %cst_62 : f32 to vector<16x32xf32>
      %73 = arith.mulf %72, %71 : vector<16x32xf32>
      %74 = math.tanh %73 : vector<16x32xf32>
      %cst_63 = arith.constant 5.000000e-01 : f32
      %75 = vector.broadcast %cst_63 : f32 to vector<16x32xf32>
      %76 = arith.mulf %75, %74 : vector<16x32xf32>
      %cst_64 = arith.constant 5.000000e-01 : f32
      %77 = vector.broadcast %cst_64 : f32 to vector<16x32xf32>
      %78 = arith.addf %76, %77 : vector<16x32xf32>
      %79 = arith.mulf %68, %arg26 : vector<16x32xf32>
      %80 = arith.mulf %60, %70 : vector<16x32xf32>
      %81 = arith.addf %79, %80 : vector<16x32xf32>
      %82 = math.tanh %81 : vector<16x32xf32>
      %83 = arith.mulf %78, %82 : vector<16x32xf32>
      %84 = vector.extract_strided_slice %52 {offsets = [0, 0], sizes = [16, 32], strides = [1, 1]} : vector<16x128xf32> to vector<16x32xf32>
      %cst_65 = arith.constant 5.000000e-01 : f32
      %85 = vector.broadcast %cst_65 : f32 to vector<16x32xf32>
      %86 = arith.mulf %85, %84 : vector<16x32xf32>
      %87 = math.tanh %86 : vector<16x32xf32>
      %cst_66 = arith.constant 5.000000e-01 : f32
      %88 = vector.broadcast %cst_66 : f32 to vector<16x32xf32>
      %89 = arith.mulf %88, %87 : vector<16x32xf32>
      %cst_67 = arith.constant 5.000000e-01 : f32
      %90 = vector.broadcast %cst_67 : f32 to vector<16x32xf32>
      %91 = arith.addf %89, %90 : vector<16x32xf32>
      %92 = vector.extract_strided_slice %52 {offsets = [0, 32], sizes = [16, 32], strides = [1, 1]} : vector<16x128xf32> to vector<16x32xf32>
      %cst_68 = arith.constant 5.000000e-01 : f32
      %93 = vector.broadcast %cst_68 : f32 to vector<16x32xf32>
      %94 = arith.mulf %93, %92 : vector<16x32xf32>
      %95 = math.tanh %94 : vector<16x32xf32>
      %cst_69 = arith.constant 5.000000e-01 : f32
      %96 = vector.broadcast %cst_69 : f32 to vector<16x32xf32>
      %97 = arith.mulf %96, %95 : vector<16x32xf32>
      %cst_70 = arith.constant 5.000000e-01 : f32
      %98 = vector.broadcast %cst_70 : f32 to vector<16x32xf32>
      %99 = arith.addf %97, %98 : vector<16x32xf32>
      %100 = vector.extract_strided_slice %52 {offsets = [0, 64], sizes = [16, 32], strides = [1, 1]} : vector<16x128xf32> to vector<16x32xf32>
      %101 = math.tanh %100 : vector<16x32xf32>
      %102 = vector.extract_strided_slice %52 {offsets = [0, 96], sizes = [16, 32], strides = [1, 1]} : vector<16x128xf32> to vector<16x32xf32>
      %cst_71 = arith.constant 5.000000e-01 : f32
      %103 = vector.broadcast %cst_71 : f32 to vector<16x32xf32>
      %104 = arith.mulf %103, %102 : vector<16x32xf32>
      %105 = math.tanh %104 : vector<16x32xf32>
      %cst_72 = arith.constant 5.000000e-01 : f32
      %106 = vector.broadcast %cst_72 : f32 to vector<16x32xf32>
      %107 = arith.mulf %106, %105 : vector<16x32xf32>
      %cst_73 = arith.constant 5.000000e-01 : f32
      %108 = vector.broadcast %cst_73 : f32 to vector<16x32xf32>
      %109 = arith.addf %107, %108 : vector<16x32xf32>
      %110 = arith.mulf %99, %arg27 : vector<16x32xf32>
      %111 = arith.mulf %91, %101 : vector<16x32xf32>
      %112 = arith.addf %110, %111 : vector<16x32xf32>
      %113 = math.tanh %112 : vector<16x32xf32>
      %114 = arith.mulf %109, %113 : vector<16x32xf32>
      %115 = arith.addf %arg28, %83 : vector<16x32xf32>
      %116 = arith.addf %arg29, %114 : vector<16x32xf32>
      scf.yield %83, %114, %81, %112, %115, %116 : vector<16x32xf32>, vector<16x32xf32>, vector<16x32xf32>, vector<16x32xf32>, vector<16x32xf32>, vector<16x32xf32>
    }
    %c4_i32_36 = arith.constant 4 : i32
    %c0_37 = arith.constant 0 : index
    %c0_38 = arith.constant 0 : index
    %29 = vector.load %arg15[%c0_37, %c0_38] : memref<16x32xf32, #tpu.memory_space<vmem>>, vector<16x32xf32>
    tpu.vector_store %arg15[%c0_37, %c0_38], %28#0 {strides = array<i32>} : memref<16x32xf32, #tpu.memory_space<vmem>>, vector<16x32xf32>,
    %c0_39 = arith.constant 0 : index
    %c0_40 = arith.constant 0 : index
    %30 = vector.load %arg16[%c0_39, %c0_40] : memref<16x32xf32, #tpu.memory_space<vmem>>, vector<16x32xf32>
    tpu.vector_store %arg16[%c0_39, %c0_40], %28#1 {strides = array<i32>} : memref<16x32xf32, #tpu.memory_space<vmem>>, vector<16x32xf32>,
    %c0_41 = arith.constant 0 : index
    %c0_42 = arith.constant 0 : index
    %31 = vector.load %arg17[%c0_41, %c0_42] : memref<16x32xf32, #tpu.memory_space<vmem>>, vector<16x32xf32>
    tpu.vector_store %arg17[%c0_41, %c0_42], %28#2 {strides = array<i32>} : memref<16x32xf32, #tpu.memory_space<vmem>>, vector<16x32xf32>,
    %c0_43 = arith.constant 0 : index
    %c0_44 = arith.constant 0 : index
    %32 = vector.load %arg18[%c0_43, %c0_44] : memref<16x32xf32, #tpu.memory_space<vmem>>, vector<16x32xf32>
    tpu.vector_store %arg18[%c0_43, %c0_44], %28#3 {strides = array<i32>} : memref<16x32xf32, #tpu.memory_space<vmem>>, vector<16x32xf32>,
    %c0_45 = arith.constant 0 : index
    %c0_46 = arith.constant 0 : index
    %33 = vector.load %arg19[%c0_45, %c0_46] : memref<16x32xf32, #tpu.memory_space<vmem>>, vector<16x32xf32>
    tpu.vector_store %arg19[%c0_45, %c0_46], %28#4 {strides = array<i32>} : memref<16x32xf32, #tpu.memory_space<vmem>>, vector<16x32xf32>,
    %c0_47 = arith.constant 0 : index
    %c0_48 = arith.constant 0 : index
    %34 = vector.load %arg20[%c0_47, %c0_48] : memref<16x32xf32, #tpu.memory_space<vmem>>, vector<16x32xf32>
    tpu.vector_store %arg20[%c0_47, %c0_48], %28#5 {strides = array<i32>} : memref<16x32xf32, #tpu.memory_space<vmem>>, vector<16x32xf32>,
    %c1_i32_49 = arith.constant 1 : i32
    %35 = arith.cmpi eq, %arg1, %c1_i32_49 : i32
    %36 = arith.extui %35 : i1 to i32
    %c0_i32_50 = arith.constant 0 : i32
    %37 = arith.cmpi ne, %36, %c0_i32_50 : i32
    scf.if %37 {
      %c0_51 = arith.constant 0 : index
      %c0_52 = arith.constant 0 : index
      %38 = vector.load %arg10[%c0_51, %c0_52] : memref<64x32xbf16, #tpu.memory_space<vmem>>, vector<64x32xbf16>
      %cst_53 = arith.constant 1.250000e-01 : f32
      %39 = vector.broadcast %cst_53 : f32 to vector<16x32xf32>
      %40 = arith.mulf %28#4, %39 : vector<16x32xf32>
      %41 = arith.truncf %40 : vector<16x32xf32> to vector<16x32xbf16>
      %cst_54 = arith.constant 1.250000e-01 : f32
      %42 = vector.broadcast %cst_54 : f32 to vector<16x32xf32>
      %43 = arith.mulf %28#5, %42 : vector<16x32xf32>
      %44 = arith.truncf %43 : vector<16x32xf32> to vector<16x32xbf16>
      %45 = vector.extract_strided_slice %38 {offsets = [0, 0], sizes = [32, 32], strides = [1, 1]} : vector<64x32xbf16> to vector<32x32xbf16>
      %cst_55 = arith.constant dense<0.000000e+00> : vector<16x32xf32>
      %46 = tpu.matmul %41, %45, %cst_55 {dimension_numbers = #tpu.dot_dimension_numbers<[1], [0], [0], [1], [0, 0, 1, 1], [], []>} : vector<16x32xbf16>, vector<32x32xbf16>, vector<16x32xf32> -> vector<16x32xf32>
      %47 = vector.extract_strided_slice %38 {offsets = [32, 0], sizes = [32, 32], strides = [1, 1]} : vector<64x32xbf16> to vector<32x32xbf16>
      %cst_56 = arith.constant dense<0.000000e+00> : vector<16x32xf32>
      %48 = tpu.matmul %44, %47, %cst_56 {dimension_numbers = #tpu.dot_dimension_numbers<[1], [0], [0], [1], [0, 0, 1, 1], [], []>} : vector<16x32xbf16>, vector<32x32xbf16>, vector<16x32xf32> -> vector<16x32xf32>
      %49 = arith.addf %46, %48 : vector<16x32xf32>
      %c0_57 = arith.constant 0 : index
      %c0_58 = arith.constant 0 : index
      %50 = vector.load %arg11[%c0_57, %c0_58] : memref<1x32xf32, #tpu.memory_space<vmem>>, vector<1x32xf32>
      %51 = vector.broadcast %50 : vector<1x32xf32> to vector<16x32xf32>
      %52 = arith.addf %49, %51 : vector<16x32xf32>
      %cst_59 = arith.constant 0.000000e+00 : f32
      %53 = vector.broadcast %cst_59 : f32 to vector<16x32xf32>
      %54 = arith.maximumf %52, %53 : vector<16x32xf32>
      %55 = arith.truncf %54 : vector<16x32xf32> to vector<16x32xbf16>
      %c0_60 = arith.constant 0 : index
      %c0_61 = arith.constant 0 : index
      %56 = vector.load %arg12[%c0_60, %c0_61] : memref<32x4xbf16, #tpu.memory_space<vmem>>, vector<32x4xbf16>
      %cst_62 = arith.constant dense<0.000000e+00> : vector<16x4xf32>
      %57 = tpu.matmul %55, %56, %cst_62 {dimension_numbers = #tpu.dot_dimension_numbers<[1], [0], [0], [1], [0, 0, 1, 1], [], []>} : vector<16x32xbf16>, vector<32x4xbf16>, vector<16x4xf32> -> vector<16x4xf32>
      %c0_63 = arith.constant 0 : index
      %c0_64 = arith.constant 0 : index
      %58 = vector.load %arg13[%c0_63, %c0_64] : memref<1x4xf32, #tpu.memory_space<vmem>>, vector<1x4xf32>
      %59 = vector.broadcast %58 : vector<1x4xf32> to vector<16x4xf32>
      %60 = arith.addf %57, %59 : vector<16x4xf32>
      %c0_65 = arith.constant 0 : index
      %c0_66 = arith.constant 0 : index
      %61 = vector.load %arg14[%c0_65, %c0_66] : memref<16x4xf32, #tpu.memory_space<vmem>>, vector<16x4xf32>
      tpu.vector_store %arg14[%c0_65, %c0_66], %60 {strides = array<i32>} : memref<16x4xf32, #tpu.memory_space<vmem>>, vector<16x4xf32>,
    } else {
    }
    return
  }
  func.func @transform_0(%arg0: i32, %arg1: i32) -> (i32, i32, i32) {
    %c0_i32 = arith.constant 0 : i32
    %c0_i32_0 = arith.constant 0 : i32
    return %arg0, %arg1, %c0_i32 : i32, i32, i32
  }
  func.func @transform_1(%arg0: i32, %arg1: i32) -> (i32, i32, i32) {
    %c1_i32 = arith.constant 1 : i32
    %0 = arith.subi %c1_i32, %arg1 : i32
    %c0_i32 = arith.constant 0 : i32
    %c0_i32_0 = arith.constant 0 : i32
    return %arg0, %0, %c0_i32 : i32, i32, i32
  }
  func.func @transform_2(%arg0: i32, %arg1: i32) -> (i32, i32) {
    %c0_i32 = arith.constant 0 : i32
    %c0_i32_0 = arith.constant 0 : i32
    %c0_i32_1 = arith.constant 0 : i32
    return %c0_i32, %c0_i32_0 : i32, i32
  }
  func.func @transform_3(%arg0: i32, %arg1: i32) -> (i32, i32) {
    %c0_i32 = arith.constant 0 : i32
    %c0_i32_0 = arith.constant 0 : i32
    %c0_i32_1 = arith.constant 0 : i32
    return %c0_i32, %c0_i32_0 : i32, i32
  }
  func.func @transform_4(%arg0: i32, %arg1: i32) -> (i32, i32) {
    %c0_i32 = arith.constant 0 : i32
    %c0_i32_0 = arith.constant 0 : i32
    %c0_i32_1 = arith.constant 0 : i32
    return %c0_i32, %c0_i32_0 : i32, i32
  }
  func.func @transform_5(%arg0: i32, %arg1: i32) -> (i32, i32) {
    %c0_i32 = arith.constant 0 : i32
    %c0_i32_0 = arith.constant 0 : i32
    %c0_i32_1 = arith.constant 0 : i32
    return %c0_i32, %c0_i32_0 : i32, i32
  }
  func.func @transform_6(%arg0: i32, %arg1: i32) -> (i32, i32) {
    %c0_i32 = arith.constant 0 : i32
    %c0_i32_0 = arith.constant 0 : i32
    %c0_i32_1 = arith.constant 0 : i32
    return %c0_i32, %c0_i32_0 : i32, i32
  }
  func.func @transform_7(%arg0: i32, %arg1: i32) -> (i32, i32) {
    %c0_i32 = arith.constant 0 : i32
    %c0_i32_0 = arith.constant 0 : i32
    %c0_i32_1 = arith.constant 0 : i32
    return %c0_i32, %c0_i32_0 : i32, i32
  }
  func.func @transform_8(%arg0: i32, %arg1: i32) -> (i32, i32) {
    %c0_i32 = arith.constant 0 : i32
    %c0_i32_0 = arith.constant 0 : i32
    %c0_i32_1 = arith.constant 0 : i32
    return %c0_i32, %c0_i32_0 : i32, i32
  }
  func.func @transform_9(%arg0: i32, %arg1: i32) -> (i32, i32) {
    %c0_i32 = arith.constant 0 : i32
    %c0_i32_0 = arith.constant 0 : i32
    %c0_i32_1 = arith.constant 0 : i32
    return %c0_i32, %c0_i32_0 : i32, i32
  }
  func.func @transform_10(%arg0: i32, %arg1: i32) -> (i32, i32) {
    %c0_i32 = arith.constant 0 : i32
    %c0_i32_0 = arith.constant 0 : i32
    %c0_i32_1 = arith.constant 0 : i32
    return %c0_i32, %c0_i32_0 : i32, i32
  }
  func.func @transform_11(%arg0: i32, %arg1: i32) -> (i32, i32) {
    %c0_i32 = arith.constant 0 : i32
    %c0_i32_0 = arith.constant 0 : i32
    %c0_i32_1 = arith.constant 0 : i32
    return %c0_i32, %c0_i32_0 : i32, i32
  }
  func.func @transform_12(%arg0: i32, %arg1: i32) -> (i32, i32) {
    %c0_i32 = arith.constant 0 : i32
    %c0_i32_0 = arith.constant 0 : i32
    return %arg0, %c0_i32 : i32, i32
  }
}

</mosaic_0001>

<bundles_post_ra>
// kernel: tpu_custom_call.1
= control target key start
LH: loop header
LB: loop body
LE: loop exit
PB: predicated region body
PF: predicated region fallthrough
CT: control target
= control target key end

     0   :  { %s1934_s21 = smov 0   ;;  %s1936_s22 = smov 0   ;;  %s2235_s0 = inlined_call_operand.vmem [shape: bf16[1,128,16], index: 0, kind: input, shape index: {}]   ;;  %s2236_s1 = inlined_call_operand.vmem [shape: bf16[1,128,16], index: 1, kind: input, shape index: {}]   ;;  %s2237_s2 = inlined_call_operand.vmem [shape: bf16[16,128], index: 2, kind: input, shape index: {}]   ;;  %s2238_s3 = inlined_call_operand.vmem [shape: f32[1,128], index: 3, kind: input, shape index: {}]   ;;  %s2239_s4 = inlined_call_operand.vmem [shape: bf16[16,128], index: 4, kind: input, shape index: {}]   ;;  %s2240_s5 = inlined_call_operand.vmem [shape: f32[1,128], index: 5, kind: input, shape index: {}]   ;;  %s2241_s6 = inlined_call_operand.vmem [shape: bf16[32,128], index: 6, kind: input, shape index: {}]   ;;  %s2242_s7 = inlined_call_operand.vmem [shape: bf16[32,128], index: 7, kind: input, shape index: {}]   ;;  %s2243_s8 = inlined_call_operand.vmem [shape: bf16[64,32], index: 8, kind: input, shape index: {}]   ;;  %s2244_s9 = inlined_call_operand.vmem [shape: f32[1,32], index: 9, kind: input, shape index: {}]   ;;  %s2245_s10 = inlined_call_operand.vmem [shape: bf16[32,4], index: 10, kind: input, shape index: {}]   ;;  %s2246_s11 = inlined_call_operand.vmem [shape: f32[1,4], index: 11, kind: input, shape index: {}]   ;;  %s2247_s12 = inlined_call_operand.vmem [shape: f32[16,4], index: 12, kind: output, shape index: {}]  }
   0x1   :  { %s1938_s23 = smov 0  }
   0x2 LB: > { %s31_s24 = sadd.s32 1, %s1803_s22  ;;  %p1422_p0 = scmp.ge.s32.totalorder %s1807_s23, 1  ;;  %s1807_s23 = sphi %s1938_s23, %s22_s23   ;;  %s1803_s22 = sphi %s1936_s22, %s2262_s22   ;;  %s1799_s21 = sphi %s1934_s21, %s2261_s21  }
   0x3   : > { %p32_p1 = scmp.ge.s32.totalorder %s31_s24, 2  ;;  %p402_p2 = scmp.lt.s32.totalorder %s1807_s23, 3 }
   0x5   : > { %s2264_s24 = smov (%p32_p1, %s31_s24), 0  ;;  %p403_p3 = pnand %p1422_p0, %p402_p2 }
   0x6   : > { %s1423_s25 = sshll.u32 (!%p403_p3), %s1799_s21, 3  ;;  %s468_s26 = ssub.s32 (!%p403_p3), 1, %s1799_s21 }
   0x7   : > { %406 = sbr.rel (%p403_p3) target bundleno = 1430 (0x596), region = 68  ;;  %p461_p4 = scmp.lt.s32.totalorder (!%p403_p3), %s1423_s25, 15 }
   0x8   : > { %s1425_s27 = sshll.u32 (!%p403_p3), %s468_s26, 3  ;;  %p1427_p6 = scmp.ne.s32.totalorder (!%p403_p3), %s1799_s21, 0 }
   0x9   : > { %p472_p5 = scmp.lt.s32.totalorder (!%p403_p3), %s1425_s27, 15 }
   0xe   : > { %s2266_s25 = smov (!%p461_p4, %s1423_s25), 15  ;;  %s2268_s27 = smov (!%p472_p5, %s1425_s27), 15 }
   0xf   : > { %s1424_s28 = sshll.u32 %s2266_s25, 2  ;;  %s1426_s14 = sshll.u32 %s2268_s27, 2  ;;  %vm491_vm0 = vcmask (!%p1427_p6), 261120   ;;  %v1861_v0 = vmov (!%p1427_p6), 0.0  }
  0x10   : > { %s1959_s13 = scalar_lea.vmem %s2235_s0, %s1424_s28  ;;  %s1964_s17 = scalar_lea.vmem %s2236_s1, %s1426_s14  ;;  %492 = vst.msk [vmem:[#allocation2] sm:$0xff] (!%p1427_p6), %vm491_vm0, %v1861_v0  ;;  %493 = vst.msk [vmem:[#allocation2 + $0x8] sm:$0xff] (!%p1427_p6), %vm491_vm0, %v1861_v0 }
  0x11   : > { %490 = sbr.rel (%p1427_p6) target bundleno = 24 (0x18), region = 72  ;;  %494 = vst.msk [vmem:[#allocation3] sm:$0xff] (!%p1427_p6), %vm491_vm0, %v1861_v0  ;;  %495 = vst.msk [vmem:[#allocation3 + $0x8] sm:$0xff] (!%p1427_p6), %vm491_vm0, %v1861_v0 }
  0x12   : > { %496 = vst.msk [vmem:[#allocation4] sm:$0xff] (!%p1427_p6), %vm491_vm0, %v1861_v0  ;;  %497 = vst.msk [vmem:[#allocation4 + $0x8] sm:$0xff] (!%p1427_p6), %vm491_vm0, %v1861_v0 }
  0x13   : > { %498 = vst.msk [vmem:[#allocation5] sm:$0xff] (!%p1427_p6), %vm491_vm0, %v1861_v0  ;;  %499 = vst.msk [vmem:[#allocation5 + $0x8] sm:$0xff] (!%p1427_p6), %vm491_vm0, %v1861_v0 }
  0x14   : > { %500 = vst.msk [vmem:[#allocation6] sm:$0xff] (!%p1427_p6), %vm491_vm0, %v1861_v0  ;;  %501 = vst.msk [vmem:[#allocation6 + $0x8] sm:$0xff] (!%p1427_p6), %vm491_vm0, %v1861_v0 }
  0x15   : > { %502 = vst.msk [vmem:[#allocation7] sm:$0xff] (!%p1427_p6), %vm491_vm0, %v1861_v0  ;;  %503 = vst.msk [vmem:[#allocation7 + $0x8] sm:$0xff] (!%p1427_p6), %vm491_vm0, %v1861_v0 }
  0x18 PF: > { %v1693_v1 = vld [vmem:[%s2237_s2] sm:$0xff]   ;;  %vm547_vm1 = vcmask 130048   ;;  %v1697_v5 = vld [vmem:[%s1959_s13 + $0x8] sm:$0xff]   ;;  %v1699_v7 = vld [vmem:[%s1959_s13 + $0x10] sm:$0xff]  }
  0x19   : > { %v1694_v2 = vld [vmem:[%s2239_s4] sm:$0xff]   ;;  %1497 = vmatprep.subr.bf16.mxu0 %v1693_v1  ;;  %v1698_v6 = vld [vmem:[%s1964_s17 + $0x8] sm:$0xff]   ;;  %v1700_v8 = vld [vmem:[%s1964_s17 + $0x10] sm:$0xff]  }
  0x1a   : > { %v1695_v3 = vld [vmem:[%s1959_s13] sm:$0xff]   ;;  %1507 = vmatprep.subr.bf16.mxu1 %v1694_v2  ;;  %1498 = vmatpush3.bf16.msra.mxu0 %v1693_v1  ;;  %v1701_v9 = vld [vmem:[%s1959_s13 + $0x18] sm:$0xff]   ;;  %v2002_v13 = vld [vmem:[%s2241_s6 + $0x8] sm:$0xf]  ;;  %s2074_s13 = smov 0  }
  0x1b   : > { %v1696_v4 = vld [vmem:[%s1964_s17] sm:$0xff]   ;;  %1508 = vmatpush3.bf16.msra.mxu1 %v1694_v2  ;;  %1499 = vmatprep.mubr.msk.bf16.mxu0 %vm547_vm1, %v1695_v3  ;;  %v1702_v10 = vld [vmem:[%s1964_s17 + $0x18] sm:$0xff]   ;;  %v2007_v14 = vld [vmem:[%s2241_s6 + $0xc] sm:$0xf] }
  0x1c   : > { %1509 = vmatprep.mubr.msk.bf16.mxu1 %vm547_vm1, %v1696_v4  ;;  %v1992_v11 = vld [vmem:[%s2241_s6] sm:$0xf]  ;;  %v1997_v12 = vld [vmem:[%s2241_s6 + $0x4] sm:$0xf]  ;;  %v2022_v17 = vld [vmem:[%s2242_s7 + $0x8] sm:$0xf] }
  0x1d   : > { %1500 = vmatmul.mubr.msk.bf16.vlgmr.msra.gmra.mrb[0].mxu0 %vm547_vm1, %v1697_v5  ;;  %v2012_v15 = vld [vmem:[%s2242_s7] sm:$0xf]  ;;  %v2017_v16 = vld [vmem:[%s2242_s7 + $0x4] sm:$0xf]  ;;  %v2027_v18 = vld [vmem:[%s2242_s7 + $0xc] sm:$0xf] }
  0x1e   : > { %1510 = vmatmul.mubr.msk.bf16.vlgmr.msra.gmra.mrb[0].mxu1 %vm547_vm1, %v1698_v6  ;;  %1503 = vmatprep.mubr.msk.bf16.mxu0 %vm547_vm1, %v1699_v7  ;;  %v2029_v19 = vld [vmem:[#allocation2] sm:$0xff]   ;;  %v2031_v20 = vld [vmem:[#allocation2 + $0x8] sm:$0xff]   ;;  %v2033_v21 = vld [vmem:[#allocation3] sm:$0xff]  }
  0x1f   : > { %1513 = vmatprep.mubr.msk.bf16.mxu1 %vm547_vm1, %v1700_v8  ;;  %v2035_v22 = vld [vmem:[#allocation3 + $0x8] sm:$0xff]   ;;  %v2037_v23 = vld [vmem:[#allocation4] sm:$0xff]   ;;  %v774_v24 = vld [vmem:[#allocation4 + $0x8] sm:$0xff]  }
  0x20   : > { %v775_v25 = vld [vmem:[#allocation5] sm:$0xff]   ;;  %v776_v26 = vld [vmem:[#allocation5 + $0x8] sm:$0xff]   ;;  %v777_v27 = vld [vmem:[#allocation6] sm:$0xff]  }
  0x21   : > { %v778_v28 = vld [vmem:[#allocation6 + $0x8] sm:$0xff]   ;;  %v779_v29 = vld [vmem:[#allocation7] sm:$0xff]   ;;  %v780_v30 = vld [vmem:[#allocation7 + $0x8] sm:$0xff]  }
  0x22   : > { %v1428_v31 = vld [vmem:[%s2238_s3] ss:$0 sm:$0xff] }
  0x23   : > { %v1438_v32 = vld [vmem:[%s2240_s5] ss:$0 sm:$0xff] }
  0x25   : > { %1504 = vmatmul.mubr.msk.bf16.gmra.mrb[4].mxu0 %vm547_vm1, %v1701_v9 }
  0x26   : > { %1514 = vmatmul.mubr.msk.bf16.gmra.mrb[4].mxu1 %vm547_vm1, %v1702_v10 }
  0xf0   : > { %v1501_v33 = vpop.f32.mrb[0].mxu0 }
  0xf1   : > { %v603_v34 = vadd.f32 %v1501_v33, %v1428_v31  ;;  %v1511_v35 = vpop.f32.mrb[0].mxu1  ;;  %v594_v36 = vpop.f32.mrb[1].mxu0 }
  0xf2   : > { %v731_v37 = vadd.f32 %v1511_v35, %v1438_v32  ;;  %v595_v38 = vadd.f32 %v1428_v31, %v594_v36  ;;  %v722_v39 = vpop.f32.mrb[1].mxu1  ;;  %v1502_v40 = vpop.f32.mrb[2].mxu0 }
  0xf3   : > { %627 = vst [vmem:[#allocation8 + $0x10] sm:$0xff] %v603_v34  ;;  %v723_v41 = vadd.f32 %v1438_v32, %v722_v39  ;;  %v606_v42 = vadd.f32 %v1502_v40, %v1428_v31  ;;  %v1512_v43 = vpop.f32.mrb[2].mxu1  ;;  %v597_v44 = vpop.f32.mrb[3].mxu0 }
  0xf4   : > { %755 = vst [vmem:[#allocation9 + $0x10] sm:$0xff] %v731_v37  ;;  %625 = vst [vmem:[#allocation8] sm:$0xff] %v595_v38  ;;  %v734_v45 = vadd.f32 %v1512_v43, %v1438_v32  ;;  %v598_v46 = vadd.f32 %v1428_v31, %v597_v44  ;;  %v725_v47 = vpop.f32.mrb[3].mxu1 }
  0xf5   : > { %753 = vst [vmem:[#allocation9] sm:$0xff] %v723_v41  ;;  %628 = vst [vmem:[#allocation8 + $0x18] sm:$0xff] %v606_v42  ;;  %v726_v48 = vadd.f32 %v1438_v32, %v725_v47 }
  0xf6   : > { %756 = vst [vmem:[#allocation9 + $0x18] sm:$0xff] %v734_v45  ;;  %626 = vst [vmem:[#allocation8 + $0x8] sm:$0xff] %v598_v46 }
  0xf7   : > { %754 = vst [vmem:[#allocation9 + $0x8] sm:$0xff] %v726_v48 }
  0xf8   : > { %v1505_v49 = vpop.f32.mrb[4].mxu0 }
  0xf9   : > { %v619_v50 = vadd.f32 %v1505_v49, %v1428_v31  ;;  %v1515_v51 = vpop.f32.mrb[4].mxu1  ;;  %v610_v52 = vpop.f32.mrb[5].mxu0 }
  0xfa   : > { %v747_v53 = vadd.f32 %v1515_v51, %v1438_v32  ;;  %v611_v54 = vadd.f32 %v1428_v31, %v610_v52  ;;  %v738_v55 = vpop.f32.mrb[5].mxu1  ;;  %v1506_v56 = vpop.f32.mrb[6].mxu0 }
  0xfb   : > { %631 = vst [vmem:[#allocation8 + $0x30] sm:$0xff] %v619_v50  ;;  %v739_v57 = vadd.f32 %v1438_v32, %v738_v55  ;;  %v622_v58 = vadd.f32 %v1506_v56, %v1428_v31  ;;  %v1516_v59 = vpop.f32.mrb[6].mxu1  ;;  %v613_v60 = vpop.f32.mrb[7].mxu0 }
  0xfc   : > { %759 = vst [vmem:[#allocation9 + $0x30] sm:$0xff] %v747_v53  ;;  %629 = vst [vmem:[#allocation8 + $0x20] sm:$0xff] %v611_v54  ;;  %v750_v61 = vadd.f32 %v1516_v59, %v1438_v32  ;;  %v614_v62 = vadd.f32 %v1428_v31, %v613_v60  ;;  %v741_v63 = vpop.f32.mrb[7].mxu1 }
  0xfd   : > { %757 = vst [vmem:[#allocation9 + $0x20] sm:$0xff] %v739_v57  ;;  %632 = vst [vmem:[#allocation8 + $0x38] sm:$0xff] %v622_v58  ;;  %v742_v0 = vadd.f32 %v1438_v32, %v741_v63 }
  0xfe   : > { %760 = vst [vmem:[#allocation9 + $0x38] sm:$0xff] %v750_v61  ;;  %630 = vst [vmem:[#allocation8 + $0x28] sm:$0xff] %v614_v62 }
  0xff   : > { %758 = vst [vmem:[#allocation9 + $0x28] sm:$0xff] %v742_v0 }
 0x100 LB: >> { %v1450_v1 = vcombine.low %v1992_v11, %v1997_v12  ;;  %v1453_v2 = vcombine.low %v2012_v15, %v2017_v16  ;;  %v1862_v3 = vmov 0.0   ;;  %v1451_v4 = vcombine.low %v2002_v13, %v2007_v14  ;;  %s800_s15 = ssub.s32 3, %s1859_s13  ;;  %s1448_s16 = sshll.u32 %s1859_s13, 4  ;;  %s1859_s13 = sphi %s2074_s13, %s786_s13   ;;  %v1855_v19 = vphi %v2029_v19, %v2260_v19   ;;  %v1851_v20 = vphi %v2031_v20, %v2259_v20   ;;  %v1847_v21 = vphi %v2033_v21, %v2258_v21   ;;  %v1843_v22 = vphi %v2035_v22, %v2257_v22   ;;  %v1839_v23 = vphi %v2037_v23, %v2256_v23   ;;  %v1835_v24 = vphi %v774_v24, %v2255_v24   ;;  %v1831_v25 = vphi %v775_v25, %v2254_v25   ;;  %v1827_v26 = vphi %v776_v26, %v2253_v26   ;;  %v1823_v27 = vphi %v777_v27, %v2252_v27   ;;  %v1819_v28 = vphi %v778_v28, %v2251_v28   ;;  %v1815_v29 = vphi %v779_v29, %v2250_v29   ;;  %v1811_v30 = vphi %v780_v30, %v2249_v30  }
 0x101   : >> { %1517 = vmatprep.subr.bf16.mxu0 %v1862_v3  ;;  %1525 = vmatprep.subr.bf16.mxu1 %v1862_v3  ;;  %v1454_v5 = vcombine.low %v2022_v17, %v2027_v18  ;;  %vm1863_vm2 = vmmov 0   ;;  %v808_v6 = vpack.c.bf16 %v1851_v20, %v1855_v19  ;;  %v866_v7 = vpack.c.bf16 %v1843_v22, %v1847_v21  ;;  %s1449_s17 = sshll.u32 %s800_s15, 4  ;;  %s802_s18 = scalar_lea.vmem [#allocation8], %s1448_s16 }
 0x102   : >> { %1518 = vmatpush3.bf16.msra.mxu0 %v1450_v1  ;;  %1526 = vmatpush3.bf16.msra.mxu1 %v1453_v2  ;;  %vm821_vm3 = vcmask 261120   ;;  %s805_s19 = scalar_lea.vmem [#allocation9], %s1449_s17  ;;  %s1864_s20 = smov 64  }
 0x103   : >> { %1519 = vmatprep.subr.bf16.mxu0 %v1862_v3  ;;  %1527 = vmatprep.subr.bf16.mxu1 %v1862_v3  ;;  %s1865_s25 = smov 32   ;;  %s1866_s26 = smov 96  }
 0x104   : >> { %1521 = vmatprep.mubr.msk.bf16.mxu0 %vm1863_vm2, %v1862_v3  ;;  %1529 = vmatprep.mubr.msk.bf16.mxu1 %vm1863_vm2, %v1862_v3  ;;  %s786_s13 = sadd.s32 1, %s1859_s13  }
 0x105   : >> { %v803_v8 = vld [vmem:[%s802_s18] sm:$0xff]  ;;  %v804_v20 = vld [vmem:[%s802_s18 + $0x8] sm:$0xff]  ;;  %p2145_p7 = scmp.ge.s32.totalorder %s786_s13, 4  }
 0x106   : >> { %1520 = vmatpush3.bf16.msra.mxu0 %v1451_v4  ;;  %1528 = vmatpush3.bf16.msra.mxu1 %v1454_v5  ;;  %v806_v9 = vld [vmem:[%s805_s19] sm:$0xff]  ;;  %v807_v36 = vld [vmem:[%s805_s19 + $0x8] sm:$0xff]  ;;  %p1456_p8 = scmp.ne.s32.totalorder (%p2145_p7), %s1799_s21, 1 }
 0x109   : >> { %1522 = vmatmul.mubr.msk.bf16.vlgmr.msra.gmra.mrb[0].mxu0 %vm821_vm3, %v808_v6  ;;  %1530 = vmatmul.mubr.msk.bf16.vlgmr.msra.gmra.mrb[0].mxu1 %vm821_vm3, %v866_v7 }
 0x1dc   : >> { %v859_v10 = vpop.f32.mrb[0].mxu0  ;;  %v916_v31 = vpop.f32.mrb[0].mxu1 }
 0x1dd   : >> { %v860_v32 = vadd.f32 %v859_v10, %v803_v8  ;;  %v917_v33 = vadd.f32 %v916_v31, %v806_v9  ;;  %v1523_v19 = vpop.f32.mrb[1].mxu0  ;;  %v1531_v21 = vpop.f32.mrb[1].mxu1 }
 0x1de   : >> { %v862_v22 = vpop.f32.mrb[2].mxu0  ;;  %v919_v34 = vpop.f32.mrb[2].mxu1 }
 0x1df   : >> { %1703 = vtanh.f32 %v860_v32  ;;  %v1524_v35 = vpop.f32.mrb[3].mxu0  ;;  %v1532_v37 = vpop.f32.mrb[3].mxu1  ;;  %v863_v38 = vadd.f32 %v862_v22, %v804_v20  ;;  %v920_v39 = vadd.f32 %v919_v34, %v807_v36  ;;  %v923_v44 = vmul.f32 0.5, %v860_v32 }
 0x1e0   : >> { %1705 = vtanh.f32 %v917_v33  ;;  %v975_v45 = vmul.f32 0.5, %v917_v33 }
 0x1e1   : >> { %1707 = vtanh.f32 %v863_v38  ;;  %v924_v46 = vmul.f32 0.5, %v863_v38  ;;  %v976_v47 = vmul.f32 0.5, %v920_v39 }
 0x1e2   : >> { %1709 = vtanh.f32 %v920_v39 }
 0x1e3   : >> { %1711 = vtanh.f32 %v923_v44 }
 0x1e4   : >> { %1713 = vtanh.f32 %v975_v45 }
 0x1e5   : >> { %1715 = vtanh.f32 %v924_v46 }
 0x1e6   : >> { %1717 = vtanh.f32 %v976_v47 }
 0x1e9   : >> { %v1704_v40 = vpop.eup %1703 }
 0x1ea   : >> { %v1706_v41 = vpop.eup %1705  ;;  %945 = vrot.lane.b32.xlu0 %v1704_v40, %s1864_s20 }
 0x1eb   : >> { %997 = vrot.lane.b32.xlu1 %v1706_v41, %s1864_s20  ;;  %v1708_v42 = vpop.eup %1707 }
 0x1ec   : >> { %v1710_v43 = vpop.eup %1709 }
 0x1ed   : >> { %v1712_v48 = vpop.eup %1711 }
 0x1ee   : >> { %947 = vrot.lane.b32.xlu0 %v1708_v42, %s1864_s20  ;;  %v927_v49 = vmul.f32 0.5, %v1712_v48 }
 0x1ef   : >> { %999 = vrot.lane.b32.xlu1 %v1710_v43, %s1864_s20 }
 0x1f0   : >> { %v929_v51 = vadd.f32 0.5, %v927_v49 }
 0x1f2   : >> { %935 = vrot.lane.b32.xlu0 %v1839_v23, %s1865_s25  ;;  %v1714_v23 = vpop.eup %1713 }
 0x1f3   : >> { %937 = vrot.lane.b32.xlu1 %v1835_v24, %s1865_s25  ;;  %v1716_v50 = vpop.eup %1715  ;;  %v979_v24 = vmul.f32 0.5, %v1714_v23 }
 0x1f4   : >> { %v928_v53 = vmul.f32 0.5, %v1716_v50 }
 0x1f6   : >> { %987 = vrot.lane.b32.xlu0 %v1831_v25, %s1865_s25  ;;  %v1718_v25 = vpop.eup %1717  ;;  %v930_v56 = vadd.f32 0.5, %v928_v53 }
 0x1f7   : >> { %989 = vrot.lane.b32.xlu1 %v1827_v26, %s1865_s25  ;;  %v981_v26 = vadd.f32 0.5, %v979_v24  ;;  %v980_v57 = vmul.f32 0.5, %v1718_v25 }
 0x1f9   : >> { %v982_v62 = vadd.f32 0.5, %v980_v57 }
 0x25c   : >> { %v946_v52 = vpop.permute.xlu0 %945 }
 0x25d   : >> { %v951_v54 = vmul.f32 %v946_v52, %v929_v51  ;;  %v998_v55 = vpop.permute.xlu1 %997 }
 0x25e   : >> { %v1003_v58 = vmul.f32 %v998_v55, %v981_v26 }
 0x25f   : >> { %955 = vrot.lane.b32.xlu0 %v951_v54, %s1865_s25 }
 0x260   : >> { %v948_v59 = vpop.permute.xlu0 %947 }
 0x261   : >> { %v952_v60 = vmul.f32 %v948_v59, %v930_v56  ;;  %v1000_v61 = vpop.permute.xlu1 %999 }
 0x262   : >> { %v1004_v63 = vmul.f32 %v1000_v61, %v982_v62 }
 0x263   : >> { %1007 = vrot.lane.b32.xlu0 %v1003_v58, %s1865_s25  ;;  %957 = vrot.lane.b32.xlu1 %v952_v60, %s1865_s25 }
 0x264   : >> { %v936_v0 = vpop.permute.xlu0 %935 }
 0x265   : >> { %v938_v1 = vpop.permute.xlu1 %937  ;;  %v941_v3 = vmul.f32 %v936_v0, %v929_v51 }
 0x266   : >> { %v942_v8 = vmul.f32 %v938_v1, %v930_v56 }
 0x267   : >> { %1009 = vrot.lane.b32.xlu1 %v1004_v63, %s1865_s25 }
 0x268   : >> { %v988_v2 = vpop.permute.xlu0 %987 }
 0x269   : >> { %v990_v5 = vpop.permute.xlu1 %989  ;;  %v993_v7 = vmul.f32 %v988_v2, %v981_v26 }
 0x26a   : >> { %v994_v33 = vmul.f32 %v990_v5, %v982_v62 }
 0x2d1   : >> { %v956_v4 = vpop.permute.xlu0 %955 }
 0x2d2   : >> { %v961_v6 = vadd.f32 %v956_v4, %v941_v3 }
 0x2d4   : >> { %1719 = vtanh.f32 %v961_v6 }
 0x2d5   : >> { %v1008_v9 = vpop.permute.xlu0 %1007  ;;  %v958_v31 = vpop.permute.xlu1 %957 }
 0x2d6   : >> { %v1013_v10 = vadd.f32 %v1008_v9, %v993_v7  ;;  %v962_v32 = vadd.f32 %v958_v31, %v942_v8 }
 0x2d8   : >> { %1721 = vtanh.f32 %v1013_v10 }
 0x2d9   : >> { %1723 = vtanh.f32 %v962_v32  ;;  %v1010_v19 = vpop.permute.xlu1 %1009 }
 0x2da   : >> { %v1014_v20 = vadd.f32 %v1010_v19, %v994_v33 }
 0x2dc   : >> { %1725 = vtanh.f32 %v1014_v20 }
 0x2de   : >> { %v1720_v21 = vpop.eup %1719 }
 0x2df   : >> { %967 = vrot.lane.b32.xlu0 %v1720_v21, %s1864_s20 }
 0x2e2   : >> { %v1722_v22 = vpop.eup %1721 }
 0x2e3   : >> { %v1724_v34 = vpop.eup %1723  ;;  %1019 = vrot.lane.b32.xlu0 %v1722_v22, %s1864_s20 }
 0x2e4   : >> { %969 = vrot.lane.b32.xlu1 %v1724_v34, %s1864_s20 }
 0x2e6   : >> { %v1726_v35 = vpop.eup %1725 }
 0x2e7   : >> { %1049 = vrot.lane.b32.xlu0 %v961_v6, %s1866_s26 }
 0x2e8   : >> { %1021 = vrot.lane.b32.xlu1 %v1726_v35, %s1864_s20 }
 0x2ec   : >> { %1051 = vrot.lane.b32.xlu1 %v962_v32, %s1866_s26 }
 0x351   : >> { %v968_v36 = vpop.permute.xlu0 %967 }
 0x352   : >> { %v973_v37 = vmul.f32 %v968_v36, %v929_v51 }
 0x354   : >> { %1029 = vrot.lane.b32.xlu0 %v973_v37, %s1865_s25 }
 0x355   : >> { %v1020_v38 = vpop.permute.xlu0 %1019 }
 0x356   : >> { %v1025_v39 = vmul.f32 %v1020_v38, %v981_v26  ;;  %v970_v40 = vpop.permute.xlu1 %969 }
 0x357   : >> { %v974_v41 = vmul.f32 %v970_v40, %v930_v56 }
 0x358   : >> { %1039 = vrot.lane.b32.xlu0 %v1025_v39, %s1865_s25 }
 0x359   : >> { %1031 = vrot.lane.b32.xlu1 %v974_v41, %s1865_s25  ;;  %v1050_v42 = vpop.permute.xlu0 %1049  }
 0x35a   : >> { %v1022_v43 = vpop.permute.xlu1 %1021  ;;  %v2256_v23 = vmov %v1050_v42  ;;  %1068 = vst.msk [vmem:[#allocation4] sm:$0xff] (%p2145_p7), %vm821_vm3, %v1050_v42 }
 0x35b   : >> { %v1026_v44 = vmul.f32 %v1022_v43, %v982_v62 }
 0x35c   : >> { %1057 = vrot.lane.b32.xlu0 %v1013_v10, %s1866_s26 }
 0x35d   : >> { %1041 = vrot.lane.b32.xlu1 %v1026_v44, %s1865_s25 }
 0x35e   : >> { %v1052_v45 = vpop.permute.xlu1 %1051  }
 0x35f   : >> { %v2255_v24 = vmov %v1052_v45  ;;  %1069 = vst.msk [vmem:[#allocation4 + $0x8] sm:$0xff] (%p2145_p7), %vm821_vm3, %v1052_v45 }
 0x361   : >> { %1059 = vrot.lane.b32.xlu1 %v1014_v20, %s1866_s26 }
 0x3c6   : >> { %v1030_v46 = vpop.permute.xlu0 %1029  }
 0x3c7   : >> { %v1035_v47 = vadd.f32 %v1823_v27, %v1030_v46   ;;  %v2260_v19 = vmov %v1030_v46  ;;  %1064 = vst.msk [vmem:[#allocation2] sm:$0xff] (%p2145_p7), %vm821_vm3, %v1030_v46 }
 0x3c9   : >> { %v2252_v27 = vmov %v1035_v47  ;;  %1072 = vst.msk [vmem:[#allocation6] sm:$0xff] (%p2145_p7), %vm821_vm3, %v1035_v47 }
 0x3ca   : >> { %v1040_v48 = vpop.permute.xlu0 %1039  }
 0x3cb   : >> { %v1045_v49 = vadd.f32 %v1815_v29, %v1040_v48   ;;  %v1032_v50 = vpop.permute.xlu1 %1031   ;;  %v2258_v21 = vmov %v1040_v48  ;;  %1066 = vst.msk [vmem:[#allocation3] sm:$0xff] (%p2145_p7), %vm821_vm3, %v1040_v48 }
 0x3cc   : >> { %v1036_v51 = vadd.f32 %v1819_v28, %v1032_v50   ;;  %v2259_v20 = vmov %v1032_v50  ;;  %1065 = vst.msk [vmem:[#allocation2 + $0x8] sm:$0xff] (%p2145_p7), %vm821_vm3, %v1032_v50 }
 0x3cd   : >> { %v2250_v29 = vmov %v1045_v49  ;;  %1074 = vst.msk [vmem:[#allocation7] sm:$0xff] (%p2145_p7), %vm821_vm3, %v1045_v49 }
 0x3ce   : >> { %v1058_v52 = vpop.permute.xlu0 %1057   ;;  %v2251_v28 = vmov %v1036_v51  ;;  %785 = sbr.rel (!%p2145_p7) target bundleno = 256 (0x100), region = 118  ;;  %1073 = vst.msk [vmem:[#allocation6 + $0x8] sm:$0xff] (%p2145_p7), %vm821_vm3, %v1036_v51 }
 0x3cf   : >> { %v1042_v53 = vpop.permute.xlu1 %1041   ;;  %v2254_v25 = vmov %v1058_v52  ;;  %1070 = vst.msk [vmem:[#allocation5] sm:$0xff] (%p2145_p7), %vm821_vm3, %v1058_v52 }
 0x3d0   : >> { %v1046_v54 = vadd.f32 %v1811_v30, %v1042_v53   ;;  %v2257_v22 = vmov %v1042_v53  ;;  %1067 = vst.msk [vmem:[#allocation3 + $0x8] sm:$0xff] (%p2145_p7), %vm821_vm3, %v1042_v53 }
 0x3d2   : >> { %v2249_v30 = vmov %v1046_v54  ;;  %1075 = vst.msk [vmem:[#allocation7 + $0x8] sm:$0xff] (%p2145_p7), %vm821_vm3, %v1046_v54 }
 0x3d3   : >> { %v1060_v55 = vpop.permute.xlu1 %1059  }
 0x3d4   : >> { %v2253_v26 = vmov %v1060_v55  ;;  %1071 = vst.msk [vmem:[#allocation5 + $0x8] sm:$0xff] (%p2145_p7), %vm821_vm3, %v1060_v55 }
 0x3d5   : > { %1079 = sbr.rel (%p1456_p8) target bundleno = 1430 (0x596), region = 83  ;;  %v1727_v11 = vld [vmem:[%s2243_s8 + $0x10] sm:$0xff] (!%p1456_p8)   ;;  %v1867_v12 = vmov (!%p1456_p8), 0.0   ;;  %v1728_v13 = vld [vmem:[%s2243_s8] sm:$0xff] (!%p1456_p8)   ;;  %v1729_v14 = vld [vmem:[%s2243_s8 + $0x18] sm:$0xff] (!%p1456_p8)   ;;  %vm1868_vm4 = vmmov (!%p1456_p8), 0  }
 0x3d6   : > { %1533 = vmatprep.subr.bf16.mxu0 (!%p1456_p8), %v1867_v12  ;;  %1541 = vmatprep.subr.bf16.mxu1 (!%p1456_p8), %v1867_v12  ;;  %v1091_v15 = vmul.f32 (!%p1456_p8), 0.125, %v1045_v49  ;;  %v1730_v16 = vld [vmem:[%s2243_s8 + $0x8] sm:$0xff] (!%p1456_p8)   ;;  %v1092_v17 = vmul.f32 (!%p1456_p8), 0.125, %v1046_v54  ;;  %v1088_v18 = vmul.f32 (!%p1456_p8), 0.125, %v1035_v47  ;;  %v1089_v27 = vmul.f32 (!%p1456_p8), 0.125, %v1036_v51  ;;  %v1731_v30 = vld [vmem:[%s2245_s10] sm:$0xff] (!%p1456_p8)  }
 0x3d7   : > { %1534 = vmatpush3.bf16.msra.mxu0 (!%p1456_p8), %v1727_v11  ;;  %1537 = vmatprep.mubr.msk.bf16.mxu0 (!%p1456_p8), %vm1868_vm4, %v1867_v12  ;;  %v1732_v23 = vld [vmem:[%s2245_s10 + $0x8] sm:$0xff] (!%p1456_p8)   ;;  %v1463_v26 = vld [vmem:[%s2244_s9] ss:$0 sm:$0xff] (!%p1456_p8)  ;;  %vm1285_vm5 = vcmask (!%p1456_p8), 31744  }
 0x3d8   : > { %1542 = vmatpush3.bf16.msra.mxu1 (!%p1456_p8), %v1728_v13  ;;  %1535 = vmatprep.subr.bf16.mxu0 (!%p1456_p8), %v1867_v12  ;;  %v1093_v28 = vpack.c.bf16 (!%p1456_p8), %v1092_v17, %v1091_v15  ;;  %v1090_v29 = vpack.c.bf16 (!%p1456_p8), %v1089_v27, %v1088_v18  ;;  %v1464_v5 = vld [vmem:[%s2246_s11] ss:$0 sm:$0xff] (!%p1456_p8) }
 0x3d9   : > { %1543 = vmatprep.subr.bf16.mxu1 (!%p1456_p8), %v1867_v12  ;;  %1545 = vmatprep.mubr.msk.bf16.mxu1 (!%p1456_p8), %vm1868_vm4, %v1867_v12 }
 0x3db   : > { %1536 = vmatpush3.bf16.msra.mxu0 (!%p1456_p8), %v1729_v14 }
 0x3dc   : > { %1544 = vmatpush3.bf16.msra.mxu1 %v1730_v16  ;;  %1549 = vmatprep.subr.bf16.mxu0 %v1867_v12 }
 0x3de   : > { %1538 = vmatmul.mubr.msk.bf16.vlgmr.msra.gmra.mrb[0].mxu0 %vm821_vm3, %v1093_v28 }
 0x3df   : > { %1546 = vmatmul.mubr.msk.bf16.vlgmr.msra.gmra.mrb[0].mxu1 %vm821_vm3, %v1090_v29  ;;  %1553 = vmatprep.mubr.msk.bf16.mxu0 %vm1868_vm4, %v1867_v12 }
 0x3e0   : > { %1550 = vmatpush3.bf16.msra.mxu0 %v1731_v30 }
 0x3e1   : > { %1551 = vmatprep.subr.bf16.mxu0 %v1867_v12 }
 0x3e4   : > { %1552 = vmatpush3.bf16.msra.mxu0 %v1732_v23 }
 0x4b1   : > { %v1143_v24 = vpop.f32.mrb[0].mxu0 }
 0x4b2   : > { %v1199_v25 = vpop.f32.mrb[0].mxu1  ;;  %v1539_v56 = vpop.f32.mrb[1].mxu0 }
 0x4b3   : > { %v1200_v57 = vadd.f32 %v1199_v25, %v1143_v24  ;;  %v1547_v58 = vpop.f32.mrb[1].mxu1  ;;  %v1146_v59 = vpop.f32.mrb[2].mxu0 }
 0x4b4   : > { %v1202_v60 = vpop.f32.mrb[2].mxu1  ;;  %v1540_v61 = vpop.f32.mrb[3].mxu0 }
 0x4b5   : > { %v1213_v62 = vadd.f32 %v1463_v26, %v1200_v57  ;;  %v1203_v63 = vadd.f32 %v1202_v60, %v1146_v59  ;;  %v1548_v0 = vpop.f32.mrb[3].mxu1 }
 0x4b7   : > { %v1214_v1 = vadd.f32 %v1463_v26, %v1203_v63  ;;  %v1215_v2 = vmax.f32 %v1213_v62, 0.0 }
 0x4b9   : > { %v1216_v3 = vmax.f32 %v1214_v1, 0.0 }
 0x4bb   : > { %v1217_v4 = vpack.c.bf16 %v1216_v3, %v1215_v2 }
 0x4bd   : > { %1554 = vmatmul.mubr.msk.bf16.vlgmr.msra.gmra.mrb[4].mxu0 %vm821_vm3, %v1217_v4 }
 0x590   : > { %v1278_v6 = vpop.f32.mrb[4].mxu0 }
 0x591   : > { %v1279_v7 = vadd.f32 %v1464_v5, %v1278_v6  ;;  %v1555_v8 = vpop.f32.mrb[5].mxu0 }
 0x592   : > { %v1281_v9 = vpop.f32.mrb[6].mxu0 }
 0x593   : > { %1286 = vst.msk [vmem:[%s2247_s12] sm:$0xff] %vm1285_vm5, %v1279_v7  ;;  %v1282_v10 = vadd.f32 %v1464_v5, %v1281_v9  ;;  %v1556_v31 = vpop.f32.mrb[7].mxu0 }
 0x595   : > { %1287 = vst.msk [vmem:[%s2247_s12 + $0x8] sm:$0xff] %vm1285_vm5, %v1282_v10 }
 0x596 PF: > { %s22_s23 = sadd.s32 1, %s1807_s23   ;;  %s2261_s21 = smov %s1803_s22 }
 0x597   : > { %p19_p9 = scmp.ge.s32.totalorder %s22_s23, 4   ;;  %s2262_s22 = smov %s2264_s24 }
 0x599   :  { %21 = sbr.rel (!%p19_p9) target bundleno = 2 (0x2), region = 129 }

</bundles_post_ra>
